<compile_context>
chip_gen: v5e
topology: v5e:2x2
jax: 0.10.0
libtpu: 0.0.40
codegen_flags: <defaults>
</compile_context>

<pallas_src>
import functools

import jax
import jax.numpy as jnp
import numpy as np
from jax.experimental import pallas as pl
from jax.experimental.pallas import tpu as pltpu


def _round_up(x: int, m: int) -> int:
    return ((x + m - 1) // m) * m


def _round_down(x: int, m: int) -> int:
    return (x // m) * m


def _patch_embed_kernel(eps, inv_d, p_ref, w_ref, b_ref, g_ref, beta_ref, o_ref):
    # p_ref:    (TN, K)  patch vectors for this block of tokens (compute dtype)
    # w_ref:    (K, D)   projection weight (compute dtype)
    # b_ref:    (1, D)   conv bias (f32)
    # g_ref:    (1, D)   LayerNorm gamma (f32)
    # beta_ref: (1, D)   LayerNorm beta (f32)
    # o_ref:    (TN, D)  normalized tokens (model dtype)
    x = jnp.dot(p_ref[...], w_ref[...], preferred_element_type=jnp.float32)
    x = x + b_ref[...].astype(jnp.float32)

    # Single-pass LayerNorm statistics (one sum + one sum-of-squares).
    s = jnp.sum(x, axis=-1, keepdims=True)
    sq = jnp.sum(x * x, axis=-1, keepdims=True)
    mean = s * inv_d
    var = jnp.maximum(sq * inv_d - mean * mean, 0.0)
    inv = jax.lax.rsqrt(var + eps)

    y = (x - mean) * inv * g_ref[...].astype(jnp.float32) + beta_ref[...].astype(jnp.float32)
    o_ref[...] = y.astype(o_ref.dtype)


def patch_embed(x, proj_weight, proj_bias, ln_gamma, ln_beta, patch_size,
                eps=1e-5, block_tokens=1024, compute_dtype=None,
                vmem_budget_bytes=36 * 1024 * 1024):
    """PatchEmbed forward.

    x:           (B, Cin, Himg, Wimg)
    proj_weight: (D, Cin, ph, pw)   -- PyTorch Conv2d weight layout
    proj_bias:   (D,)
    ln_gamma:    (D,)
    ln_beta:     (D,)
    compute_dtype: optional narrower dtype (e.g. jnp.bfloat16) for the
                   patches/weight HBM traffic; accumulation & LN stay f32.
    Returns (tokens (B, H*W, D), (H, W)).
    """
    B, Cin, Himg, Wimg = x.shape
    ph, pw = patch_size
    H, W = Himg // ph, Wimg // pw
    D = proj_weight.shape[0]
    K = Cin * ph * pw
    N = H * W
    T = B * N

    out_dtype = x.dtype
    cdtype = jnp.dtype(compute_dtype) if compute_dtype is not None else jnp.dtype(x.dtype)

    # PyTorch Conv2d (stride == kernel, no padding) drops trailing rows/cols
    # that don't fill a full patch.
    x = x[:, :, :H * ph, :W * pw]
    if x.dtype != cdtype:
        # Cast BEFORE the relayout so the materialized im2col copy is narrow.
        x = x.astype(cdtype)

    # im2col for non-overlapping patches: one fused XLA relayout (layout only,
    # the conv itself is the in-kernel matmul).
    # (B,Cin,H,ph,W,pw) -> (B,H,W,Cin,ph,pw) -> (T, K)  [(cin,i,j) order]
    patches = x.reshape(B, Cin, H, ph, W, pw)
    patches = jnp.transpose(patches, (0, 2, 4, 1, 3, 5)).reshape(T, K)

    # (D, Cin, ph, pw) -> (K, D), matching the (cin, i, j) patch ordering.
    w_kd = jnp.transpose(proj_weight.reshape(D, K), (1, 0)).astype(cdtype)
    bias2d = proj_bias.reshape(1, D).astype(jnp.float32)
    gamma2d = ln_gamma.reshape(1, D).astype(jnp.float32)
    beta2d = ln_beta.reshape(1, D).astype(jnp.float32)

    in_it = cdtype.itemsize
    out_it = jnp.dtype(out_dtype).itemsize

    # ---- choose the token-block size TN -----------------------------------
    # VMEM footprint: double-buffered patch/out blocks + resident params
    # (budgeted as double-buffered even though we try to single-buffer them)
    # + slack for the f32 LN temporaries.
    resident = 2 * K * D * in_it + 6 * D * 4
    per_tok = 2 * K * in_it + 2 * D * out_it + 3 * D * 4
    tn = int(block_tokens)
    tn = min(tn, _round_up(T, 8))                                  # no bigger than needed
    avail = max(vmem_budget_bytes - resident, per_tok * 8)
    tn = min(tn, max(_round_down(avail // per_tok, 8), 8))         # fit VMEM budget
    if T > 8:
        tn = min(tn, _round_up(pl.cdiv(T, 2), 8))                  # >= 2 grid steps (v7x: 2 TCs)
    if tn >= 256:
        tn = _round_down(tn, 256)                                  # MXU-friendly when large
    tn = max(tn, 8)

    grid = (pl.cdiv(T, tn),)
    vmem_limit = int(resident + tn * per_tok + (4 << 20))
    vmem_limit = min(max(vmem_limit, 16 << 20), 64 << 20)

    flops = 2 * T * K * D
    bytes_accessed = T * K * in_it + K * D * in_it + T * D * out_it + 3 * D * 4

    def _call(fancy):
        # `fancy`: single-buffer grid-invariant operands and attach a cost
        # estimate; fall back to the plain (previously validated) config if
        # this JAX/Mosaic version rejects either.
        def const_spec(shape):
            idx = lambda i: (0, 0)
            if fancy:
                return pl.BlockSpec(shape, idx, pipeline_mode=pl.Buffered(1))
            return pl.BlockSpec(shape, idx)

        extra = {}
        if fancy:
            extra["cost_estimate"] = pl.CostEstimate(
                flops=flops, transcendentals=T, bytes_accessed=bytes_accessed)

        return pl.pallas_call(
            functools.partial(_patch_embed_kernel, float(eps), float(1.0 / D)),
            out_shape=jax.ShapeDtypeStruct((T, D), out_dtype),
            grid_spec=pltpu.PrefetchScalarGridSpec(
                num_scalar_prefetch=0,
                grid=grid,
                in_specs=[
                    pl.BlockSpec((tn, K), lambda i: (i, 0)),   # patch block (pipelined)
                    const_spec((K, D)),                        # projection weight (resident)
                    const_spec((1, D)),                        # conv bias
                    const_spec((1, D)),                        # LN gamma
                    const_spec((1, D)),                        # LN beta
                ],
                out_specs=pl.BlockSpec((tn, D), lambda i: (i, 0)),
            ),
            compiler_params=pltpu.CompilerParams(
                dimension_semantics=("parallel",),
                vmem_limit_bytes=vmem_limit),
            **extra,
        )(patches, w_kd, bias2d, gamma2d, beta2d)

    try:
        out2d = _call(True)
    except Exception:
        out2d = _call(False)

    tokens = out2d.reshape(B, N, D)
    return tokens, (H, W)


def _reference(x, proj_weight, proj_bias, ln_gamma, ln_beta, patch_size, eps=1e-5):
    """Pure-JAX reference mirroring the PyTorch forward."""
    ph, pw = patch_size
    y = jax.lax.conv_general_dilated(
        x, proj_weight,
        window_strides=(ph, pw),
        padding="VALID",
        dimension_numbers=("NCHW", "OIHW", "NCHW"),
    ) + proj_bias[None, :, None, None]
    B, D, H, W = y.shape
    y = jnp.transpose(y.reshape(B, D, H * W), (0, 2, 1))          # (B, N, D)
    mean = jnp.mean(y, axis=-1, keepdims=True)
    var = jnp.mean((y - mean) ** 2, axis=-1, keepdims=True)
    y = (y - mean) / jnp.sqrt(var + eps) * ln_gamma + ln_beta
    return y, (H, W)


if __name__ == "__main__":
    def make_case(key, B, Cin, Himg, Wimg, ph, pw, D):
        kx, kw, kb, kg, kbe = jax.random.split(key, 5)
        x = jax.random.normal(kx, (B, Cin, Himg, Wimg), dtype=jnp.float32)
        w = jax.random.normal(kw, (D, Cin, ph, pw), dtype=jnp.float32) * 0.1
        b = jax.random.normal(kb, (D,), dtype=jnp.float32) * 0.1
        g = 1.0 + 0.1 * jax.random.normal(kg, (D,), dtype=jnp.float32)
        be = 0.1 * jax.random.normal(kbe, (D,), dtype=jnp.float32)
        return x, w, b, g, be

    k1, k2 = jax.random.split(jax.random.PRNGKey(0))

    # Case 1: D multiple of 128 (fully lane-dense stores), f32 compute.
    B, Cin, Himg, Wimg, psize, D = 2, 4, 16, 16, (4, 4), 128
    x, w, b, g, be = make_case(k1, B, Cin, Himg, Wimg, psize[0], psize[1], D)
    out, (H, W) = patch_embed(x, w, b, g, be, psize)
    out = jax.block_until_ready(out)
    ref, (Hr, Wr) = _reference(x, w, b, g, be, psize)
    ref = jax.block_until_ready(ref)
    np.testing.assert_allclose(np.asarray(out), np.asarray(ref), rtol=1e-4, atol=1e-4)
    assert (H, W) == (Hr, Wr) == (Himg // psize[0], Wimg // psize[1])
    assert out.shape == (B, H * W, D)

    # Case 1b: bf16 compute dtype (halved HBM read traffic), f32 accumulation.
    out_bf, _ = patch_embed(x, w, b, g, be, psize, compute_dtype=jnp.bfloat16)
    out_bf = jax.block_until_ready(out_bf)
    np.testing.assert_allclose(np.asarray(out_bf), np.asarray(ref), rtol=5e-2, atol=5e-2)

    # Case 2: CoaT-like dims (Cin=3, D=64) with a token count (25) that does
    # not divide the block size -> exercises the clipped (un-padded) tail block.
    B, Cin, Himg, Wimg, psize, D = 1, 3, 20, 20, (4, 4), 64
    x, w, b, g, be = make_case(k2, B, Cin, Himg, Wimg, psize[0], psize[1], D)
    out2, (H2, W2) = patch_embed(x, w, b, g, be, psize)
    out2 = jax.block_until_ready(out2)
    ref2, _ = _reference(x, w, b, g, be, psize)
    np.testing.assert_allclose(np.asarray(out2), np.asarray(ref2), rtol=1e-4, atol=1e-4)
    assert out2.shape == (B, H2 * W2, D)

    print("KERNEL_OK")
</pallas_src>

<mosaic_0001>
module attributes {stable_mosaic.version = 11 : i64} {
  func.func @_patch_embed_kernel(%arg0: i32, %arg1: memref<16x64xf32, #tpu.memory_space<vmem>>, %arg2: memref<64x128xf32, #tpu.memory_space<vmem>>, %arg3: memref<1x128xf32, #tpu.memory_space<vmem>>, %arg4: memref<1x128xf32, #tpu.memory_space<vmem>>, %arg5: memref<1x128xf32, #tpu.memory_space<vmem>>, %arg6: memref<16x128xf32, #tpu.memory_space<vmem>>) attributes {dimension_semantics = [#tpu.dimension_semantics<parallel>], iteration_bounds = array<i64: 2>, scalar_prefetch = 0 : i64, scratch_operands = 0 : i64, tpu.core_type = #tpu.core_type<tc>, window_params = [{transform_indices = @transform_0, window_bounds = array<i64: 16, 64>}, {pipeline_mode = #tpu.pipeline_mode<synchronous>, transform_indices = @transform_1, window_bounds = array<i64: 64, 128>}, {pipeline_mode = #tpu.pipeline_mode<synchronous>, transform_indices = @transform_2, window_bounds = array<i64: 1, 128>}, {pipeline_mode = #tpu.pipeline_mode<synchronous>, transform_indices = @transform_3, window_bounds = array<i64: 1, 128>}, {pipeline_mode = #tpu.pipeline_mode<synchronous>, transform_indices = @transform_4, window_bounds = array<i64: 1, 128>}, {transform_indices = @transform_5, window_bounds = array<i64: 16, 128>}]} {
    %c0 = arith.constant 0 : index
    %c0_0 = arith.constant 0 : index
    %0 = vector.load %arg1[%c0, %c0_0] : memref<16x64xf32, #tpu.memory_space<vmem>>, vector<16x64xf32>
    %c0_1 = arith.constant 0 : index
    %c0_2 = arith.constant 0 : index
    %1 = vector.load %arg2[%c0_1, %c0_2] : memref<64x128xf32, #tpu.memory_space<vmem>>, vector<64x128xf32>
    %cst = arith.constant dense<0.000000e+00> : vector<16x128xf32>
    %2 = tpu.matmul %0, %1, %cst {dimension_numbers = #tpu.dot_dimension_numbers<[1], [0], [0], [1], [0, 0, 1, 1], [], []>} : vector<16x64xf32>, vector<64x128xf32>, vector<16x128xf32> -> vector<16x128xf32>
    %c0_3 = arith.constant 0 : index
    %c0_4 = arith.constant 0 : index
    %3 = vector.load %arg3[%c0_3, %c0_4] : memref<1x128xf32, #tpu.memory_space<vmem>>, vector<1x128xf32>
    %4 = vector.broadcast %3 : vector<1x128xf32> to vector<16x128xf32>
    %5 = arith.addf %2, %4 : vector<16x128xf32>
    %cst_5 = arith.constant dense<0.000000e+00> : vector<16xf32>
    %6 = vector.multi_reduction <add>, %5, %cst_5 [1] : vector<16x128xf32> to vector<16xf32>
    %7 = vector.shape_cast %6 : vector<16xf32> to vector<16x1xf32>
    %8 = arith.mulf %5, %5 : vector<16x128xf32>
    %cst_6 = arith.constant dense<0.000000e+00> : vector<16xf32>
    %9 = vector.multi_reduction <add>, %8, %cst_6 [1] : vector<16x128xf32> to vector<16xf32>
    %10 = vector.shape_cast %9 : vector<16xf32> to vector<16x1xf32>
    %cst_7 = arith.constant 7.812500e-03 : f32
    %11 = vector.broadcast %cst_7 : f32 to vector<16x1xf32>
    %12 = arith.mulf %7, %11 : vector<16x1xf32>
    %cst_8 = arith.constant 7.812500e-03 : f32
    %13 = vector.broadcast %cst_8 : f32 to vector<16x1xf32>
    %14 = arith.mulf %10, %13 : vector<16x1xf32>
    %15 = arith.mulf %12, %12 : vector<16x1xf32>
    %16 = arith.subf %14, %15 : vector<16x1xf32>
    %cst_9 = arith.constant 0.000000e+00 : f32
    %17 = vector.broadcast %cst_9 : f32 to vector<16x1xf32>
    %18 = arith.maximumf %16, %17 : vector<16x1xf32>
    %cst_10 = arith.constant 9.99999974E-6 : f32
    %19 = vector.broadcast %cst_10 : f32 to vector<16x1xf32>
    %20 = arith.addf %18, %19 : vector<16x1xf32>
    %21 = math.rsqrt %20 : vector<16x1xf32>
    %22 = vector.broadcast %12 : vector<16x1xf32> to vector<16x128xf32>
    %23 = arith.subf %5, %22 : vector<16x128xf32>
    %24 = vector.broadcast %21 : vector<16x1xf32> to vector<16x128xf32>
    %25 = arith.mulf %23, %24 : vector<16x128xf32>
    %c0_11 = arith.constant 0 : index
    %c0_12 = arith.constant 0 : index
    %26 = vector.load %arg4[%c0_11, %c0_12] : memref<1x128xf32, #tpu.memory_space<vmem>>, vector<1x128xf32>
    %27 = vector.broadcast %26 : vector<1x128xf32> to vector<16x128xf32>
    %28 = arith.mulf %25, %27 : vector<16x128xf32>
    %c0_13 = arith.constant 0 : index
    %c0_14 = arith.constant 0 : index
    %29 = vector.load %arg5[%c0_13, %c0_14] : memref<1x128xf32, #tpu.memory_space<vmem>>, vector<1x128xf32>
    %30 = vector.broadcast %29 : vector<1x128xf32> to vector<16x128xf32>
    %31 = arith.addf %28, %30 : vector<16x128xf32>
    %c0_15 = arith.constant 0 : index
    %c0_16 = arith.constant 0 : index
    %32 = vector.load %arg6[%c0_15, %c0_16] : memref<16x128xf32, #tpu.memory_space<vmem>>, vector<16x128xf32>
    tpu.vector_store %arg6[%c0_15, %c0_16], %31 {strides = array<i32>} : memref<16x128xf32, #tpu.memory_space<vmem>>, vector<16x128xf32>,
    return
  }
  func.func @transform_0(%arg0: i32) -> (i32, i32) {
    %c0_i32 = arith.constant 0 : i32
    %c0_i32_0 = arith.constant 0 : i32
    return %arg0, %c0_i32 : i32, i32
  }
  func.func @transform_1(%arg0: i32) -> (i32, i32) {
    %c0_i32 = arith.constant 0 : i32
    %c0_i32_0 = arith.constant 0 : i32
    %c0_i32_1 = arith.constant 0 : i32
    return %c0_i32, %c0_i32_0 : i32, i32
  }
  func.func @transform_2(%arg0: i32) -> (i32, i32) {
    %c0_i32 = arith.constant 0 : i32
    %c0_i32_0 = arith.constant 0 : i32
    %c0_i32_1 = arith.constant 0 : i32
    return %c0_i32, %c0_i32_0 : i32, i32
  }
  func.func @transform_3(%arg0: i32) -> (i32, i32) {
    %c0_i32 = arith.constant 0 : i32
    %c0_i32_0 = arith.constant 0 : i32
    %c0_i32_1 = arith.constant 0 : i32
    return %c0_i32, %c0_i32_0 : i32, i32
  }
  func.func @transform_4(%arg0: i32) -> (i32, i32) {
    %c0_i32 = arith.constant 0 : i32
    %c0_i32_0 = arith.constant 0 : i32
    %c0_i32_1 = arith.constant 0 : i32
    return %c0_i32, %c0_i32_0 : i32, i32
  }
  func.func @transform_5(%arg0: i32) -> (i32, i32) {
    %c0_i32 = arith.constant 0 : i32
    %c0_i32_0 = arith.constant 0 : i32
    return %arg0, %c0_i32 : i32, i32
  }
}

module attributes {stable_mosaic.version = 11 : i64} {
  func.func @_patch_embed_kernel(%arg0: i32, %arg1: memref<16x64xf32, #tpu.memory_space<vmem>>, %arg2: memref<64x128xf32, #tpu.memory_space<vmem>>, %arg3: memref<1x128xf32, #tpu.memory_space<vmem>>, %arg4: memref<1x128xf32, #tpu.memory_space<vmem>>, %arg5: memref<1x128xf32, #tpu.memory_space<vmem>>, %arg6: memref<16x128xf32, #tpu.memory_space<vmem>>) attributes {dimension_semantics = [#tpu.dimension_semantics<parallel>], iteration_bounds = array<i64: 2>, scalar_prefetch = 0 : i64, scratch_operands = 0 : i64, tpu.core_type = #tpu.core_type<tc>, window_params = [{transform_indices = @transform_0, window_bounds = array<i64: 16, 64>}, {pipeline_mode = #tpu.pipeline_mode<synchronous>, transform_indices = @transform_1, window_bounds = array<i64: 64, 128>}, {pipeline_mode = #tpu.pipeline_mode<synchronous>, transform_indices = @transform_2, window_bounds = array<i64: 1, 128>}, {pipeline_mode = #tpu.pipeline_mode<synchronous>, transform_indices = @transform_3, window_bounds = array<i64: 1, 128>}, {pipeline_mode = #tpu.pipeline_mode<synchronous>, transform_indices = @transform_4, window_bounds = array<i64: 1, 128>}, {transform_indices = @transform_5, window_bounds = array<i64: 16, 128>}]} {
    %c0 = arith.constant 0 : index
    %c0_0 = arith.constant 0 : index
    %0 = vector.load %arg1[%c0, %c0_0] : memref<16x64xf32, #tpu.memory_space<vmem>>, vector<16x64xf32>
    %c0_1 = arith.constant 0 : index
    %c0_2 = arith.constant 0 : index
    %1 = vector.load %arg2[%c0_1, %c0_2] : memref<64x128xf32, #tpu.memory_space<vmem>>, vector<64x128xf32>
    %cst = arith.constant dense<0.000000e+00> : vector<16x128xf32>
    %2 = tpu.matmul %0, %1, %cst {dimension_numbers = #tpu.dot_dimension_numbers<[1], [0], [0], [1], [0, 0, 1, 1], [], []>} : vector<16x64xf32>, vector<64x128xf32>, vector<16x128xf32> -> vector<16x128xf32>
    %c0_3 = arith.constant 0 : index
    %c0_4 = arith.constant 0 : index
    %3 = vector.load %arg3[%c0_3, %c0_4] : memref<1x128xf32, #tpu.memory_space<vmem>>, vector<1x128xf32>
    %4 = vector.broadcast %3 : vector<1x128xf32> to vector<16x128xf32>
    %5 = arith.addf %2, %4 : vector<16x128xf32>
    %cst_5 = arith.constant dense<0.000000e+00> : vector<16xf32>
    %6 = vector.multi_reduction <add>, %5, %cst_5 [1] : vector<16x128xf32> to vector<16xf32>
    %7 = vector.shape_cast %6 : vector<16xf32> to vector<16x1xf32>
    %8 = arith.mulf %5, %5 : vector<16x128xf32>
    %cst_6 = arith.constant dense<0.000000e+00> : vector<16xf32>
    %9 = vector.multi_reduction <add>, %8, %cst_6 [1] : vector<16x128xf32> to vector<16xf32>
    %10 = vector.shape_cast %9 : vector<16xf32> to vector<16x1xf32>
    %cst_7 = arith.constant 7.812500e-03 : f32
    %11 = vector.broadcast %cst_7 : f32 to vector<16x1xf32>
    %12 = arith.mulf %7, %11 : vector<16x1xf32>
    %cst_8 = arith.constant 7.812500e-03 : f32
    %13 = vector.broadcast %cst_8 : f32 to vector<16x1xf32>
    %14 = arith.mulf %10, %13 : vector<16x1xf32>
    %15 = arith.mulf %12, %12 : vector<16x1xf32>
    %16 = arith.subf %14, %15 : vector<16x1xf32>
    %cst_9 = arith.constant 0.000000e+00 : f32
    %17 = vector.broadcast %cst_9 : f32 to vector<16x1xf32>
    %18 = arith.maximumf %16, %17 : vector<16x1xf32>
    %cst_10 = arith.constant 9.99999974E-6 : f32
    %19 = vector.broadcast %cst_10 : f32 to vector<16x1xf32>
    %20 = arith.addf %18, %19 : vector<16x1xf32>
    %21 = math.rsqrt %20 : vector<16x1xf32>
    %22 = vector.broadcast %12 : vector<16x1xf32> to vector<16x128xf32>
    %23 = arith.subf %5, %22 : vector<16x128xf32>
    %24 = vector.broadcast %21 : vector<16x1xf32> to vector<16x128xf32>
    %25 = arith.mulf %23, %24 : vector<16x128xf32>
    %c0_11 = arith.constant 0 : index
    %c0_12 = arith.constant 0 : index
    %26 = vector.load %arg4[%c0_11, %c0_12] : memref<1x128xf32, #tpu.memory_space<vmem>>, vector<1x128xf32>
    %27 = vector.broadcast %26 : vector<1x128xf32> to vector<16x128xf32>
    %28 = arith.mulf %25, %27 : vector<16x128xf32>
    %c0_13 = arith.constant 0 : index
    %c0_14 = arith.constant 0 : index
    %29 = vector.load %arg5[%c0_13, %c0_14] : memref<1x128xf32, #tpu.memory_space<vmem>>, vector<1x128xf32>
    %30 = vector.broadcast %29 : vector<1x128xf32> to vector<16x128xf32>
    %31 = arith.addf %28, %30 : vector<16x128xf32>
    %c0_15 = arith.constant 0 : index
    %c0_16 = arith.constant 0 : index
    %32 = vector.load %arg6[%c0_15, %c0_16] : memref<16x128xf32, #tpu.memory_space<vmem>>, vector<16x128xf32>
    tpu.vector_store %arg6[%c0_15, %c0_16], %31 {strides = array<i32>} : memref<16x128xf32, #tpu.memory_space<vmem>>, vector<16x128xf32>,
    return
  }
  func.func @transform_0(%arg0: i32) -> (i32, i32) {
    %c0_i32 = arith.constant 0 : i32
    %c0_i32_0 = arith.constant 0 : i32
    return %arg0, %c0_i32 : i32, i32
  }
  func.func @transform_1(%arg0: i32) -> (i32, i32) {
    %c0_i32 = arith.constant 0 : i32
    %c0_i32_0 = arith.constant 0 : i32
    %c0_i32_1 = arith.constant 0 : i32
    return %c0_i32, %c0_i32_0 : i32, i32
  }
  func.func @transform_2(%arg0: i32) -> (i32, i32) {
    %c0_i32 = arith.constant 0 : i32
    %c0_i32_0 = arith.constant 0 : i32
    %c0_i32_1 = arith.constant 0 : i32
    return %c0_i32, %c0_i32_0 : i32, i32
  }
  func.func @transform_3(%arg0: i32) -> (i32, i32) {
    %c0_i32 = arith.constant 0 : i32
    %c0_i32_0 = arith.constant 0 : i32
    %c0_i32_1 = arith.constant 0 : i32
    return %c0_i32, %c0_i32_0 : i32, i32
  }
  func.func @transform_4(%arg0: i32) -> (i32, i32) {
    %c0_i32 = arith.constant 0 : i32
    %c0_i32_0 = arith.constant 0 : i32
    %c0_i32_1 = arith.constant 0 : i32
    return %c0_i32, %c0_i32_0 : i32, i32
  }
  func.func @transform_5(%arg0: i32) -> (i32, i32) {
    %c0_i32 = arith.constant 0 : i32
    %c0_i32_0 = arith.constant 0 : i32
    return %arg0, %c0_i32 : i32, i32
  }
}

</mosaic_0001>

<bundles_post_ra>
// kernel: tpu_custom_call.1
= control target key start
LH: loop header
LB: loop body
LE: loop exit
PB: predicated region body
PF: predicated region fallthrough
CT: control target
= control target key end

     0   :  { %10 = vsyncpa [#allocation3], 0  ;;  %s887_s0 = inlined_call_operand.hbm [shape: f32[32,64], index: 0, kind: input, shape index: {}]   ;;  %s888_s1 = inlined_call_operand.hbm [shape: f32[64,128], index: 1, kind: input, shape index: {}]   ;;  %s889_s2 = inlined_call_operand.vmem [shape: f32[1,128], index: 2, kind: input, shape index: {}]   ;;  %s890_s3 = inlined_call_operand.vmem [shape: f32[1,128], index: 3, kind: input, shape index: {}]   ;;  %s891_s4 = inlined_call_operand.vmem [shape: f32[1,128], index: 4, kind: input, shape index: {}]   ;;  %s892_s5 = inlined_call_operand.hbm [shape: f32[32,128], index: 5, kind: output, shape index: {}]  }
   0x1   :  { %12 = vsyncpa [#allocation3 + $0x1], 0 }
   0x2   :  { %13 = vsyncpa [#allocation6], 0 }
   0x3   :  { %14 = vsyncpa [#allocation4], 0 }
   0x4   :  { %16 = vsyncpa [#allocation4 + $0x1], 0  ;;  %s730_s18 = smov 0   ;;  %s732_s19 = smov 0  }
   0x5   :  { %s734_s20 = smov 0   ;;  %s736_s21 = smov 0  }
   0x6 LB: > { %s751_s22 = sadd.s32 4294967295, %s693_s21   ;;  %s467_s23 = sadd.s32 4294967294, %s693_s21   ;;  %s693_s21 = sphi %s736_s21, %s904_s21   ;;  %s689_s20 = sphi %s734_s20, %s903_s20   ;;  %s685_s19 = sphi %s732_s19, %s902_s19   ;;  %s681_s18 = sphi %s730_s18, %s901_s18  }
   0x7   : > { %p42_p0 = scmp.ne.s32.totalorder %s685_s19, %s681_s18  ;;  %p43_p1 = scmp.eq.s32.totalorder %s751_s22, 0 }
   0x8   : > { %p150_p2 = scmp.eq.s32.totalorder %s751_s22, 1  ;;  %p156_p3 = scmp.eq.s32.totalorder %s467_s23, 1 }
   0x9   : > { %p760_p4 = por %p43_p1, %p42_p0  ;;  %p468_p5 = scmp.ge.s32.totalorder %s693_s21, 1 }
   0xa   : > { %p765_p6 = por %p156_p3, %p42_p0  ;;  %p163_p7 = scmp.lt.s32.totalorder %s693_s21, 3 }
   0xb   : > { %s174_s28 = sshll.u32 %s888_s1, 4  ;;  %s695_s30 = smov [#allocation5]   ;;  %s175_s28 = int_to_ptr.hbm [resolvable:$true] %s174_s28 }
   0xc   : > { %p773_p8 = pnand %p468_p5, %p163_p7  ;;  %s176_s6 = sshll.u32 %s695_s30, 4  ;;  %s177_s6 = int_to_ptr.vmem [resolvable:$true] %s176_s6 }
   0xd   : > { %s783_s7 = sadd.s32 1, %s693_s21   ;;  %s893_s8 = smov 128  }
   0xe   : > { %p503_p9 = pneg %p773_p8  ;;  %s697_s9 = smov 8  }
   0xf   : > { %s26_s10 = ssub.s32 %s693_s21, %s783_s7  ;;  %s29_s11 = sadd.s32 1, %s689_s20 }
  0x10   : > { %p504_p10 = pnand %p503_p9, %p43_p1  ;;  %p27_p12 = scmp.eq.s32.totalorder %s26_s10, 0 }
  0x11   : > { %p36_p13 = scmp.ne.s32.totalorder %s689_s20, %s685_s19  ;;  %p37_p0 = scmp.eq.s32.totalorder %s693_s21, 0 }
  0x12   : > { %506 = dma.hbm_to_vmem [thread:$0]  (!%p504_p10), %s175_s28, 1024, %s177_s6, [#allocation6], %s893_s8, %s893_s8, %s697_s9  }
  0x13   : > { %s795_s12 = scalar_select %p27_p12, %s689_s20, %s29_s11  }
  0x14   : > { %p799_p3 = por %p150_p2, %p36_p13  ;;  %p516_p5 = scmp.lt.s32.totalorder %s693_s21, 2 }
  0x15   : > { %s199_s14 = sand.u32 1, %s689_s20   ;;  %s485_s15 = sshll.u32 %s693_s21, 4 }
  0x16   : > { %p38_p7 = por %p37_p0, %p36_p13  ;;  %s471_s16 = sshll.u32 %s199_s14, 4 }
  0x17   : > { %s208_s26 = scalar_lea.hbm %s887_s0, %s485_s15  ;;  %s203_s28 = scalar_lea.vmem [#allocation2], %s471_s16 }
  0x18   : > { %s209_s27 = sshll.u32 %s208_s26, 4  ;;  %s211_s30 = sshll.u32 %s203_s28, 4  ;;  %s210_s27 = int_to_ptr.hbm [resolvable:$true] %s209_s27  ;;  %s212_s30 = int_to_ptr.vmem [resolvable:$true] %s211_s30 }
  0x19   : > { %p809_p9 = pnand %p516_p5, %p38_p7  ;;  %s200_s10 = scalar_lea.sflag [#allocation3], %s199_s14 }
  0x1a   : > { %s593_s11 = sshra.s32 %s210_s27, 4  ;;  %s600_s16 = scalar_lea.hbm %s887_s0, 32  ;;  %s594_s11 = int_to_ptr.hbm [resolvable:$true] %s593_s11 }
  0x1b   : > { %s595_s8 = scalar_lea.hbm %s594_s11, 16  ;;  %p597_p10 = pneg %p809_p9 }
  0x1c   : > { %p596_p2 = scmp.ne.s32.totalorder %s594_s11, %s595_s8  ;;  %p601_p0 = scmp.lt.s32.totalorder %s594_s11, %s887_s0 }
  0x1d   : > { %p602_p5 = scmp.lt.s32.totalorder %s600_s16, %s595_s8 }
  0x1e   : > { %p598_p12 = pnand %p597_p10, %p596_p2 }
  0x1f   : > { %p603_p7 = por %p602_p5, %p601_p0 }
  0x20   : > { %p599_p13 = pneg %p598_p12 }
  0x22   : > { %p604_p11 = pnand %p603_p7, %p599_p13 }
  0x24   : > { %607 = shalt.err (!%p604_p11)
}
  0x25   : > { %s899_s14 = smov 128   ;;  %223 = sbr.rel (%p773_p8) target bundleno = 351 (0x15f), region = 40 }
  0x26   : > { %510 = dma.hbm_to_vmem [thread:$0]  (!%p809_p9), %s210_s27, 256, %s212_s30, %s200_s10, %s899_s14, %s899_s14, %s697_s9  }
  0x27   : > { %s829_s28 = sand.u32 (!%p773_p8), 1, %s685_s19  }
  0x28   : > { %s475_s8 = sshll.u32 (!%p773_p8), %s829_s28, 4  ;;  %s226_s11 = scalar_lea.sflag (!%p773_p8), [#allocation3], %s829_s28 }
  0x29   : > { %s229_s15 = scalar_lea.vmem (!%p773_p8), [#allocation2], %s475_s8 }
  0x2a   : > { %668 = dma.done.wait (%p760_p4), %s226_s11, 256  }
  0x2b   : > { %670 = vsyncadd (%p760_p4), %s226_s11, 4294967040 }
  0x2c   : > { %672 = dma.done.wait (%p43_p1), [#allocation6], 1024  }
  0x2d   : > { %674 = vsyncadd (%p43_p1), [#allocation6], 4294966272  ;;  %v273_v0 = vld [vmem:[#allocation5 + $0x38] sm:$0xff]  ;;  %v272_v1 = vld [vmem:[#allocation5 + $0x30] sm:$0xff]  ;;  %vm278_vm0 = vcmask 523264   ;;  %s486_s10 = sshll.u32 %s751_s22, 4 }
  0x2e   : > { %293 = vmatpush.msra.mxu0 %v273_v0  ;;  %487 = vmatpush.msra.mxu1 %v273_v0  ;;  %v271_v2 = vld [vmem:[#allocation5 + $0x28] sm:$0xff]  ;;  %v270_v3 = vld [vmem:[#allocation5 + $0x20] sm:$0xff]  ;;  %v269_v4 = vld [vmem:[#allocation5 + $0x18] sm:$0xff]  ;;  %s261_s17 = scalar_lea.vmem [#allocation7], %s475_s8  ;;  %s380_s26 = scalar_lea.hbm %s892_s5, %s486_s10 }
  0x2f   : > { %v268_v5 = vld [vmem:[#allocation5 + $0x10] sm:$0xff]  ;;  %v267_v6 = vld [vmem:[#allocation5 + $0x8] sm:$0xff]  ;;  %v266_v7 = vld [vmem:[#allocation5] sm:$0xff]  ;;  %s381_s14 = sshll.u32 %s261_s17, 4  ;;  %s383_s22 = sshll.u32 %s380_s26, 4  ;;  %s382_s14 = int_to_ptr.vmem [resolvable:$true] %s381_s14  ;;  %s384_s22 = int_to_ptr.hbm [resolvable:$true] %s383_s22 }
  0x30   : > { %294 = vmatpush.msra.mxu0 %v272_v1  ;;  %488 = vmatpush.msra.mxu1 %v272_v1  ;;  %v264_v8 = vld [vmem:[%s229_s15] sm:$0xff]  ;;  %v265_v9 = vld [vmem:[%s229_s15 + $0x8] sm:$0xff]  ;;  %s369_s11 = scalar_lea.sflag [#allocation4], %s829_s28  ;;  %s637_s15 = sshra.s32 %s384_s22, 4  ;;  %s638_s15 = int_to_ptr.hbm [resolvable:$true] %s637_s15 }
  0x31   : > { %v556_v10 = vld [vmem:[%s889_s2] ss:$0 sm:$0xff]  ;;  %s639_s8 = scalar_lea.hbm %s638_s15, 16  ;;  %s643_s9 = scalar_lea.hbm %s892_s5, 32 }
  0x32   : > { %295 = vmatpush.msra.mxu0 %v271_v2  ;;  %489 = vmatpush.msra.mxu1 %v271_v2  ;;  %v557_v41 = vld [vmem:[%s890_s3] ss:$0 sm:$0xff]  ;;  %p640_p1 = scmp.ne.s32.totalorder %s638_s15, %s639_s8  ;;  %p644_p11 = scmp.lt.s32.totalorder %s638_s15, %s892_s5 }
  0x33   : > { %v558_v44 = vld [vmem:[%s891_s4] ss:$0 sm:$0xff]  ;;  %p645_p9 = scmp.lt.s32.totalorder %s643_s9, %s639_s8 }
  0x34   : > { %296 = vmatpush.msra.mxu0 %v270_v3  ;;  %490 = vmatpush.msra.mxu1 %v270_v3  ;;  %p641_p4 = pnand %p640_p1, %p799_p3 }
  0x35   : > { %p646_p2 = por %p645_p9, %p644_p11 }
  0x36   : > { %297 = vmatpush.msra.mxu0 %v269_v4  ;;  %491 = vmatpush.msra.mxu1 %v269_v4  ;;  %p642_p8 = pneg %p641_p4 }
  0x38   : > { %298 = vmatpush.msra.mxu0 %v268_v5  ;;  %492 = vmatpush.msra.mxu1 %v268_v5  ;;  %p647_p10 = pnand %p646_p2, %p642_p8 }
  0x3a   : > { %299 = vmatpush.msra.mxu0 %v267_v6  ;;  %493 = vmatpush.msra.mxu1 %v267_v6 }
  0x3c   : > { %300 = vmatpush.msra.mxu0 %v266_v7  ;;  %494 = vmatpush.msra.mxu1 %v266_v7 }
  0x3d   : > { %478 = vmatmul.msk.f32.vlgmr.msra.gmra.mxu0 %vm278_vm0, %v264_v8  ;;  %479 = vmatmul.msk.f32.vlgmr.msra.gmra.mxu1 %vm278_vm0, %v265_v9 }
  0xba   : > { %v302_v11 = vpop.f32.mrf.mxu0  ;;  %v305_v13 = vpop.f32.mrf.mxu1 }
  0xbb   : > { %v303_v12 = vadd.f32 %v556_v10, %v302_v11  ;;  %v306_v15 = vadd.f32 %v556_v10, %v305_v13 }
  0xbd   : > { %308 = vadd.xlane.f32.xlu0 %v303_v12  ;;  %v312_v14 = vmul.f32 %v303_v12, %v303_v12  ;;  %v313_v16 = vmul.f32 %v306_v15, %v306_v15 }
  0xbf   : > { %314 = vadd.xlane.f32.xlu1 %v312_v14 }
  0xc5   : > { %310 = vadd.xlane.f32.xlu0 %v306_v15 }
  0xc7   : > { %316 = vadd.xlane.f32.xlu1 %v313_v16 }
 0x130   : > { %v309_v17 = vpop.xlane.xlu0 %308 }
 0x131   : > { %v318_v18 = vmul.f32 0.0078125, %v309_v17 }
 0x132   : > { %v315_v19 = vpop.xlane.xlu1 %314 }
 0x133   : > { %v322_v20 = vmul.f32 %v318_v18, %v318_v18  ;;  %v320_v21 = vmul.f32 0.0078125, %v315_v19  ;;  %v350_v40 = vsub.f32 %v303_v12, %v318_v18 }
 0x135   : > { %v324_v22 = vsub.f32 %v320_v21, %v322_v20 }
 0x137   : > { %v326_v23 = vmax.f32 %v324_v22, 0.0 }
 0x138   : > { %v311_v24 = vpop.xlane.xlu0 %310 }
 0x139   : > { %v328_v25 = vadd.f32 1e-05, %v326_v23  ;;  %v319_v26 = vmul.f32 0.0078125, %v311_v24 }
 0x13a   : > { %v317_v27 = vpop.xlane.xlu1 %316 }
 0x13b   : > { %559 = vrsqrt.f32 %v328_v25  ;;  %v323_v28 = vmul.f32 %v319_v26, %v319_v26  ;;  %v321_v29 = vmul.f32 0.0078125, %v317_v27  ;;  %vm336_vm2 = vweird.f32 %v328_v25 }
 0x13c   : > { %v351_v52 = vsub.f32 %v306_v15, %v319_v26 }
 0x13d   : > { %v325_v30 = vsub.f32 %v321_v29, %v323_v28 }
 0x13f   : > { %v327_v31 = vmax.f32 %v325_v30, 0.0 }
 0x141   : > { %v560_v32 = vpop.eup %559  ;;  %v329_v34 = vadd.f32 1e-05, %v327_v31 }
 0x142   : > { %v331_v33 = vmul.f32 %v560_v32, %v328_v25  ;;  %vm337_vm1 = vweird.f32 %v560_v32 }
 0x143   : > { %561 = vrsqrt.f32 %v329_v34  ;;  %vm338_vm3 = vmor %vm336_vm2, %vm337_vm1  ;;  %vm346_vm5 = vweird.f32 %v329_v34 }
 0x144   : > { %v332_v35 = vmul.f32 %v560_v32, %v331_v33 }
 0x146   : > { %v333_v36 = vmul.f32 0.5, %v332_v35 }
 0x148   : > { %v334_v37 = vsub.f32 1.5, %v333_v36 }
 0x149   : > { %v562_v38 = vpop.eup %561 }
 0x14a   : > { %v335_v39 = vmul.f32 %v560_v32, %v334_v37  ;;  %v341_v42 = vmul.f32 %v562_v38, %v329_v34  ;;  %vm347_vm4 = vweird.f32 %v562_v38 }
 0x14b   : > { %vm348_vm6 = vmor %vm346_vm5, %vm347_vm4 }
 0x14c   : > { %v339_v43 = vsel %vm338_vm3, %v560_v32, %v335_v39  ;;  %v342_v46 = vmul.f32 %v562_v38, %v341_v42 }
 0x14d   : > { %v352_v45 = vmul.f32 %v350_v40, %v339_v43 }
 0x14e   : > { %v343_v48 = vmul.f32 0.5, %v342_v46 }
 0x14f   : > { %v358_v47 = vmul.f32 %v557_v41, %v352_v45 }
 0x150   : > { %v344_v50 = vsub.f32 1.5, %v343_v48 }
 0x151   : > { %v364_v49 = vadd.f32 %v558_v44, %v358_v47 }
 0x152   : > { %v345_v51 = vmul.f32 %v562_v38, %v344_v50 }
 0x153   : > { %366 = vst [vmem:[%s261_s17] sm:$0xff] %v364_v49 }
 0x154   : > { %v349_v53 = vsel %vm348_vm6, %v562_v38, %v345_v51 }
 0x155   : > { %v353_v54 = vmul.f32 %v351_v52, %v349_v53 }
 0x157   : > { %v359_v55 = vmul.f32 %v557_v41, %v353_v54 }
 0x159   : > { %v365_v56 = vadd.f32 %v558_v44, %v359_v55 }
 0x15b   : > { %367 = vst [vmem:[%s261_s17 + $0x8] sm:$0xff] %v365_v56 }
 0x15c   : > { %650 = shalt.err (!%p647_p10)
}
 0x15d   : > { %s698_s28 = smov 128   ;;  %s699_s6 = smov 8  }
 0x15e   : > { %501 = dma.vmem_to_hbm [thread:$0]  (%p799_p3), %s382_s14, 256, %s384_s22, %s369_s11, %s698_s28, %s698_s28, %s699_s6  }
 0x15f PF: > { %s398_s10 = sand.u32 1, %s681_s18   ;;  %p900_p12 = scmp.ge.s32.totalorder %s693_s21, 2 }
 0x160   : > { %s399_s17 = scalar_lea.sflag [#allocation4], %s398_s10 }
 0x161   : > { %p512_p13 = pnand %p900_p12, %p765_p6 }
 0x163   : > { %p513_p0 = pneg %p512_p13 }
 0x165   : > { %676 = dma.done.wait (%p513_p0), %s399_s17, 256  }
 0x166   : > { %678 = vsyncadd (%p513_p0), %s399_s17, 4294967040  ;;  %p19_p5 = scmp.ge.s32.totalorder %s783_s7, 4   ;;  %s901_s18 = smov %s685_s19 }
 0x167   : > { %s902_s19 = smov %s689_s20  ;;  %s903_s20 = smov %s795_s12 }
 0x168   : > { %s904_s21 = smov %s783_s7  ;;  %21 = sbr.rel (!%p19_p5) target bundleno = 6 (0x6), region = 89 }
 0x16d   :  { %405 = vsyncpa [#allocation3], 1 }
 0x16e   :  { %407 = vsyncpa [#allocation3 + $0x1], 1 }
 0x16f   :  { %408 = vsyncpa [#allocation6], 1 }
 0x170   :  { %409 = vsyncpa [#allocation4], 1 }
 0x171   :  { %411 = vsyncpa [#allocation4 + $0x1], 1 }

// kernel: tpu_custom_call.1
= control target key start
LH: loop header
LB: loop body
LE: loop exit
PB: predicated region body
PF: predicated region fallthrough
CT: control target
= control target key end

     0   :  { %10 = vsyncpa [#allocation3], 0  ;;  %s887_s0 = inlined_call_operand.hbm [shape: f32[32,64], index: 0, kind: input, shape index: {}]   ;;  %s888_s1 = inlined_call_operand.hbm [shape: f32[64,128], index: 1, kind: input, shape index: {}]   ;;  %s889_s2 = inlined_call_operand.vmem [shape: f32[1,128], index: 2, kind: input, shape index: {}]   ;;  %s890_s3 = inlined_call_operand.vmem [shape: f32[1,128], index: 3, kind: input, shape index: {}]   ;;  %s891_s4 = inlined_call_operand.vmem [shape: f32[1,128], index: 4, kind: input, shape index: {}]   ;;  %s892_s5 = inlined_call_operand.hbm [shape: f32[32,128], index: 5, kind: output, shape index: {}]  }
   0x1   :  { %12 = vsyncpa [#allocation3 + $0x1], 0 }
   0x2   :  { %13 = vsyncpa [#allocation6], 0 }
   0x3   :  { %14 = vsyncpa [#allocation4], 0 }
   0x4   :  { %16 = vsyncpa [#allocation4 + $0x1], 0  ;;  %s730_s18 = smov 0   ;;  %s732_s19 = smov 0  }
   0x5   :  { %s734_s20 = smov 0   ;;  %s736_s21 = smov 0  }
   0x6 LB: > { %s751_s22 = sadd.s32 4294967295, %s693_s21   ;;  %s467_s23 = sadd.s32 4294967294, %s693_s21   ;;  %s693_s21 = sphi %s736_s21, %s904_s21   ;;  %s689_s20 = sphi %s734_s20, %s903_s20   ;;  %s685_s19 = sphi %s732_s19, %s902_s19   ;;  %s681_s18 = sphi %s730_s18, %s901_s18  }
   0x7   : > { %p42_p0 = scmp.ne.s32.totalorder %s685_s19, %s681_s18  ;;  %p43_p1 = scmp.eq.s32.totalorder %s751_s22, 0 }
   0x8   : > { %p150_p2 = scmp.eq.s32.totalorder %s751_s22, 1  ;;  %p156_p3 = scmp.eq.s32.totalorder %s467_s23, 1 }
   0x9   : > { %p760_p4 = por %p43_p1, %p42_p0  ;;  %p468_p5 = scmp.ge.s32.totalorder %s693_s21, 1 }
   0xa   : > { %p765_p6 = por %p156_p3, %p42_p0  ;;  %p163_p7 = scmp.lt.s32.totalorder %s693_s21, 3 }
   0xb   : > { %s174_s28 = sshll.u32 %s888_s1, 4  ;;  %s695_s30 = smov [#allocation5]   ;;  %s175_s28 = int_to_ptr.hbm [resolvable:$true] %s174_s28 }
   0xc   : > { %p773_p8 = pnand %p468_p5, %p163_p7  ;;  %s176_s6 = sshll.u32 %s695_s30, 4  ;;  %s177_s6 = int_to_ptr.vmem [resolvable:$true] %s176_s6 }
   0xd   : > { %s783_s7 = sadd.s32 1, %s693_s21   ;;  %s893_s8 = smov 128  }
   0xe   : > { %p503_p9 = pneg %p773_p8  ;;  %s697_s9 = smov 8  }
   0xf   : > { %s26_s10 = ssub.s32 %s693_s21, %s783_s7  ;;  %s29_s11 = sadd.s32 1, %s689_s20 }
  0x10   : > { %p504_p10 = pnand %p503_p9, %p43_p1  ;;  %p27_p12 = scmp.eq.s32.totalorder %s26_s10, 0 }
  0x11   : > { %p36_p13 = scmp.ne.s32.totalorder %s689_s20, %s685_s19  ;;  %p37_p0 = scmp.eq.s32.totalorder %s693_s21, 0 }
  0x12   : > { %506 = dma.hbm_to_vmem [thread:$0]  (!%p504_p10), %s175_s28, 1024, %s177_s6, [#allocation6], %s893_s8, %s893_s8, %s697_s9  }
  0x13   : > { %s795_s12 = scalar_select %p27_p12, %s689_s20, %s29_s11  }
  0x14   : > { %p799_p3 = por %p150_p2, %p36_p13  ;;  %p516_p5 = scmp.lt.s32.totalorder %s693_s21, 2 }
  0x15   : > { %s199_s14 = sand.u32 1, %s689_s20   ;;  %s485_s15 = sshll.u32 %s693_s21, 4 }
  0x16   : > { %p38_p7 = por %p37_p0, %p36_p13  ;;  %s471_s16 = sshll.u32 %s199_s14, 4 }
  0x17   : > { %s208_s26 = scalar_lea.hbm %s887_s0, %s485_s15  ;;  %s203_s28 = scalar_lea.vmem [#allocation2], %s471_s16 }
  0x18   : > { %s209_s27 = sshll.u32 %s208_s26, 4  ;;  %s211_s30 = sshll.u32 %s203_s28, 4  ;;  %s210_s27 = int_to_ptr.hbm [resolvable:$true] %s209_s27  ;;  %s212_s30 = int_to_ptr.vmem [resolvable:$true] %s211_s30 }
  0x19   : > { %p809_p9 = pnand %p516_p5, %p38_p7  ;;  %s200_s10 = scalar_lea.sflag [#allocation3], %s199_s14 }
  0x1a   : > { %s593_s11 = sshra.s32 %s210_s27, 4  ;;  %s600_s16 = scalar_lea.hbm %s887_s0, 32  ;;  %s594_s11 = int_to_ptr.hbm [resolvable:$true] %s593_s11 }
  0x1b   : > { %s595_s8 = scalar_lea.hbm %s594_s11, 16  ;;  %p597_p10 = pneg %p809_p9 }
  0x1c   : > { %p596_p2 = scmp.ne.s32.totalorder %s594_s11, %s595_s8  ;;  %p601_p0 = scmp.lt.s32.totalorder %s594_s11, %s887_s0 }
  0x1d   : > { %p602_p5 = scmp.lt.s32.totalorder %s600_s16, %s595_s8 }
  0x1e   : > { %p598_p12 = pnand %p597_p10, %p596_p2 }
  0x1f   : > { %p603_p7 = por %p602_p5, %p601_p0 }
  0x20   : > { %p599_p13 = pneg %p598_p12 }
  0x22   : > { %p604_p11 = pnand %p603_p7, %p599_p13 }
  0x24   : > { %607 = shalt.err (!%p604_p11)
}
  0x25   : > { %s899_s14 = smov 128   ;;  %223 = sbr.rel (%p773_p8) target bundleno = 351 (0x15f), region = 40 }
  0x26   : > { %510 = dma.hbm_to_vmem [thread:$0]  (!%p809_p9), %s210_s27, 256, %s212_s30, %s200_s10, %s899_s14, %s899_s14, %s697_s9  }
  0x27   : > { %s829_s28 = sand.u32 (!%p773_p8), 1, %s685_s19  }
  0x28   : > { %s475_s8 = sshll.u32 (!%p773_p8), %s829_s28, 4  ;;  %s226_s11 = scalar_lea.sflag (!%p773_p8), [#allocation3], %s829_s28 }
  0x29   : > { %s229_s15 = scalar_lea.vmem (!%p773_p8), [#allocation2], %s475_s8 }
  0x2a   : > { %668 = dma.done.wait (%p760_p4), %s226_s11, 256  }
  0x2b   : > { %670 = vsyncadd (%p760_p4), %s226_s11, 4294967040 }
  0x2c   : > { %672 = dma.done.wait (%p43_p1), [#allocation6], 1024  }
  0x2d   : > { %674 = vsyncadd (%p43_p1), [#allocation6], 4294966272  ;;  %v273_v0 = vld [vmem:[#allocation5 + $0x38] sm:$0xff]  ;;  %v272_v1 = vld [vmem:[#allocation5 + $0x30] sm:$0xff]  ;;  %vm278_vm0 = vcmask 523264   ;;  %s486_s10 = sshll.u32 %s751_s22, 4 }
  0x2e   : > { %293 = vmatpush.msra.mxu0 %v273_v0  ;;  %487 = vmatpush.msra.mxu1 %v273_v0  ;;  %v271_v2 = vld [vmem:[#allocation5 + $0x28] sm:$0xff]  ;;  %v270_v3 = vld [vmem:[#allocation5 + $0x20] sm:$0xff]  ;;  %v269_v4 = vld [vmem:[#allocation5 + $0x18] sm:$0xff]  ;;  %s261_s17 = scalar_lea.vmem [#allocation7], %s475_s8  ;;  %s380_s26 = scalar_lea.hbm %s892_s5, %s486_s10 }
  0x2f   : > { %v268_v5 = vld [vmem:[#allocation5 + $0x10] sm:$0xff]  ;;  %v267_v6 = vld [vmem:[#allocation5 + $0x8] sm:$0xff]  ;;  %v266_v7 = vld [vmem:[#allocation5] sm:$0xff]  ;;  %s381_s14 = sshll.u32 %s261_s17, 4  ;;  %s383_s22 = sshll.u32 %s380_s26, 4  ;;  %s382_s14 = int_to_ptr.vmem [resolvable:$true] %s381_s14  ;;  %s384_s22 = int_to_ptr.hbm [resolvable:$true] %s383_s22 }
  0x30   : > { %294 = vmatpush.msra.mxu0 %v272_v1  ;;  %488 = vmatpush.msra.mxu1 %v272_v1  ;;  %v264_v8 = vld [vmem:[%s229_s15] sm:$0xff]  ;;  %v265_v9 = vld [vmem:[%s229_s15 + $0x8] sm:$0xff]  ;;  %s369_s11 = scalar_lea.sflag [#allocation4], %s829_s28  ;;  %s637_s15 = sshra.s32 %s384_s22, 4  ;;  %s638_s15 = int_to_ptr.hbm [resolvable:$true] %s637_s15 }
  0x31   : > { %v556_v10 = vld [vmem:[%s889_s2] ss:$0 sm:$0xff]  ;;  %s639_s8 = scalar_lea.hbm %s638_s15, 16  ;;  %s643_s9 = scalar_lea.hbm %s892_s5, 32 }
  0x32   : > { %295 = vmatpush.msra.mxu0 %v271_v2  ;;  %489 = vmatpush.msra.mxu1 %v271_v2  ;;  %v557_v41 = vld [vmem:[%s890_s3] ss:$0 sm:$0xff]  ;;  %p640_p1 = scmp.ne.s32.totalorder %s638_s15, %s639_s8  ;;  %p644_p11 = scmp.lt.s32.totalorder %s638_s15, %s892_s5 }
  0x33   : > { %v558_v44 = vld [vmem:[%s891_s4] ss:$0 sm:$0xff]  ;;  %p645_p9 = scmp.lt.s32.totalorder %s643_s9, %s639_s8 }
  0x34   : > { %296 = vmatpush.msra.mxu0 %v270_v3  ;;  %490 = vmatpush.msra.mxu1 %v270_v3  ;;  %p641_p4 = pnand %p640_p1, %p799_p3 }
  0x35   : > { %p646_p2 = por %p645_p9, %p644_p11 }
  0x36   : > { %297 = vmatpush.msra.mxu0 %v269_v4  ;;  %491 = vmatpush.msra.mxu1 %v269_v4  ;;  %p642_p8 = pneg %p641_p4 }
  0x38   : > { %298 = vmatpush.msra.mxu0 %v268_v5  ;;  %492 = vmatpush.msra.mxu1 %v268_v5  ;;  %p647_p10 = pnand %p646_p2, %p642_p8 }
  0x3a   : > { %299 = vmatpush.msra.mxu0 %v267_v6  ;;  %493 = vmatpush.msra.mxu1 %v267_v6 }
  0x3c   : > { %300 = vmatpush.msra.mxu0 %v266_v7  ;;  %494 = vmatpush.msra.mxu1 %v266_v7 }
  0x3d   : > { %478 = vmatmul.msk.f32.vlgmr.msra.gmra.mxu0 %vm278_vm0, %v264_v8  ;;  %479 = vmatmul.msk.f32.vlgmr.msra.gmra.mxu1 %vm278_vm0, %v265_v9 }
  0xba   : > { %v302_v11 = vpop.f32.mrf.mxu0  ;;  %v305_v13 = vpop.f32.mrf.mxu1 }
  0xbb   : > { %v303_v12 = vadd.f32 %v556_v10, %v302_v11  ;;  %v306_v15 = vadd.f32 %v556_v10, %v305_v13 }
  0xbd   : > { %308 = vadd.xlane.f32.xlu0 %v303_v12  ;;  %v312_v14 = vmul.f32 %v303_v12, %v303_v12  ;;  %v313_v16 = vmul.f32 %v306_v15, %v306_v15 }
  0xbf   : > { %314 = vadd.xlane.f32.xlu1 %v312_v14 }
  0xc5   : > { %310 = vadd.xlane.f32.xlu0 %v306_v15 }
  0xc7   : > { %316 = vadd.xlane.f32.xlu1 %v313_v16 }
 0x130   : > { %v309_v17 = vpop.xlane.xlu0 %308 }
 0x131   : > { %v318_v18 = vmul.f32 0.0078125, %v309_v17 }
 0x132   : > { %v315_v19 = vpop.xlane.xlu1 %314 }
 0x133   : > { %v322_v20 = vmul.f32 %v318_v18, %v318_v18  ;;  %v320_v21 = vmul.f32 0.0078125, %v315_v19  ;;  %v350_v40 = vsub.f32 %v303_v12, %v318_v18 }
 0x135   : > { %v324_v22 = vsub.f32 %v320_v21, %v322_v20 }
 0x137   : > { %v326_v23 = vmax.f32 %v324_v22, 0.0 }
 0x138   : > { %v311_v24 = vpop.xlane.xlu0 %310 }
 0x139   : > { %v328_v25 = vadd.f32 1e-05, %v326_v23  ;;  %v319_v26 = vmul.f32 0.0078125, %v311_v24 }
 0x13a   : > { %v317_v27 = vpop.xlane.xlu1 %316 }
 0x13b   : > { %559 = vrsqrt.f32 %v328_v25  ;;  %v323_v28 = vmul.f32 %v319_v26, %v319_v26  ;;  %v321_v29 = vmul.f32 0.0078125, %v317_v27  ;;  %vm336_vm2 = vweird.f32 %v328_v25 }
 0x13c   : > { %v351_v52 = vsub.f32 %v306_v15, %v319_v26 }
 0x13d   : > { %v325_v30 = vsub.f32 %v321_v29, %v323_v28 }
 0x13f   : > { %v327_v31 = vmax.f32 %v325_v30, 0.0 }
 0x141   : > { %v560_v32 = vpop.eup %559  ;;  %v329_v34 = vadd.f32 1e-05, %v327_v31 }
 0x142   : > { %v331_v33 = vmul.f32 %v560_v32, %v328_v25  ;;  %vm337_vm1 = vweird.f32 %v560_v32 }
 0x143   : > { %561 = vrsqrt.f32 %v329_v34  ;;  %vm338_vm3 = vmor %vm336_vm2, %vm337_vm1  ;;  %vm346_vm5 = vweird.f32 %v329_v34 }
 0x144   : > { %v332_v35 = vmul.f32 %v560_v32, %v331_v33 }
 0x146   : > { %v333_v36 = vmul.f32 0.5, %v332_v35 }
 0x148   : > { %v334_v37 = vsub.f32 1.5, %v333_v36 }
 0x149   : > { %v562_v38 = vpop.eup %561 }
 0x14a   : > { %v335_v39 = vmul.f32 %v560_v32, %v334_v37  ;;  %v341_v42 = vmul.f32 %v562_v38, %v329_v34  ;;  %vm347_vm4 = vweird.f32 %v562_v38 }
 0x14b   : > { %vm348_vm6 = vmor %vm346_vm5, %vm347_vm4 }
 0x14c   : > { %v339_v43 = vsel %vm338_vm3, %v560_v32, %v335_v39  ;;  %v342_v46 = vmul.f32 %v562_v38, %v341_v42 }
 0x14d   : > { %v352_v45 = vmul.f32 %v350_v40, %v339_v43 }
 0x14e   : > { %v343_v48 = vmul.f32 0.5, %v342_v46 }
 0x14f   : > { %v358_v47 = vmul.f32 %v557_v41, %v352_v45 }
 0x150   : > { %v344_v50 = vsub.f32 1.5, %v343_v48 }
 0x151   : > { %v364_v49 = vadd.f32 %v558_v44, %v358_v47 }
 0x152   : > { %v345_v51 = vmul.f32 %v562_v38, %v344_v50 }
 0x153   : > { %366 = vst [vmem:[%s261_s17] sm:$0xff] %v364_v49 }
 0x154   : > { %v349_v53 = vsel %vm348_vm6, %v562_v38, %v345_v51 }
 0x155   : > { %v353_v54 = vmul.f32 %v351_v52, %v349_v53 }
 0x157   : > { %v359_v55 = vmul.f32 %v557_v41, %v353_v54 }
 0x159   : > { %v365_v56 = vadd.f32 %v558_v44, %v359_v55 }
 0x15b   : > { %367 = vst [vmem:[%s261_s17 + $0x8] sm:$0xff] %v365_v56 }
 0x15c   : > { %650 = shalt.err (!%p647_p10)
}
 0x15d   : > { %s698_s28 = smov 128   ;;  %s699_s6 = smov 8  }
 0x15e   : > { %501 = dma.vmem_to_hbm [thread:$0]  (%p799_p3), %s382_s14, 256, %s384_s22, %s369_s11, %s698_s28, %s698_s28, %s699_s6  }
 0x15f PF: > { %s398_s10 = sand.u32 1, %s681_s18   ;;  %p900_p12 = scmp.ge.s32.totalorder %s693_s21, 2 }
 0x160   : > { %s399_s17 = scalar_lea.sflag [#allocation4], %s398_s10 }
 0x161   : > { %p512_p13 = pnand %p900_p12, %p765_p6 }
 0x163   : > { %p513_p0 = pneg %p512_p13 }
 0x165   : > { %676 = dma.done.wait (%p513_p0), %s399_s17, 256  }
 0x166   : > { %678 = vsyncadd (%p513_p0), %s399_s17, 4294967040  ;;  %p19_p5 = scmp.ge.s32.totalorder %s783_s7, 4   ;;  %s901_s18 = smov %s685_s19 }
 0x167   : > { %s902_s19 = smov %s689_s20  ;;  %s903_s20 = smov %s795_s12 }
 0x168   : > { %s904_s21 = smov %s783_s7  ;;  %21 = sbr.rel (!%p19_p5) target bundleno = 6 (0x6), region = 89 }
 0x16d   :  { %405 = vsyncpa [#allocation3], 1 }
 0x16e   :  { %407 = vsyncpa [#allocation3 + $0x1], 1 }
 0x16f   :  { %408 = vsyncpa [#allocation6], 1 }
 0x170   :  { %409 = vsyncpa [#allocation4], 1 }
 0x171   :  { %411 = vsyncpa [#allocation4 + $0x1], 1 }

</bundles_post_ra>
